<compile_context>
chip_gen: v7x
topology: tpu7x:2x2x1
jax: 0.10.0
libtpu: 0.0.40
codegen_flags: <defaults>
</compile_context>

<pallas_src>
import math
import functools

import jax
import jax.numpy as jnp
from jax import lax
from jax.experimental import pallas as pl
from jax.experimental.pallas import tpu as pltpu


# Safe on v5e/v6e/v7x. On v5e/v6e (128 MiB physical VMEM) this can be raised
# to ~64-100 MiB together with larger tiles; keep 32 MiB when v7x (64 MiB
# physical) must be supported by the same binary.
_VMEM_LIMIT = 32 * 1024 * 1024


# ----------------------------------------------------------------------------
# Tile helpers
# ----------------------------------------------------------------------------
def _pick_tile(dim, targets):
    """Largest target tile that divides `dim`; full dim if none (always legal)."""
    if dim <= targets[0]:
        return dim
    for t in targets:
        if dim % t == 0:
            return t
    # TODO(synk): ragged tiling (pl.cdiv grid + masked epilogue) instead of a
    # full-dim fallback block for non-divisible dims.
    return dim


def _pick_head_group(num_heads, dk):
    """Smallest head group G (dividing H) whose width G*dk is lane aligned
    (%128==0); fall back to all heads (full-D block, always legal)."""
    for g in range(1, num_heads):
        if num_heads % g == 0 and (g * dk) % 128 == 0:
            return g
    return num_heads


# ----------------------------------------------------------------------------
# One-time parameter preprocessing (hoisted out of the forward).
# ----------------------------------------------------------------------------
def prepare_params(params, num_heads):
    """params: 'Wq','Wk','Wv','Wo', each (D, D) in torch Linear layout (out,in).
    Pre-transposes, folds 1/sqrt(dk) into Wq, casts to bf16, stacks QKV."""
    D = params["Wq"].shape[0]
    assert D % num_heads == 0
    dk = D // num_heads
    scale = 1.0 / math.sqrt(dk)
    wq_t = (params["Wq"].T * scale).astype(jnp.bfloat16)   # scale folded into Wq
    wk_t = params["Wk"].T.astype(jnp.bfloat16)
    wv_t = params["Wv"].T.astype(jnp.bfloat16)
    wo_t = params["Wo"].T.astype(jnp.bfloat16)
    return {
        "wq_t": wq_t, "wk_t": wk_t, "wv_t": wv_t, "wo_t": wo_t,
        "wqkv": jnp.stack([wq_t, wk_t, wv_t]),              # (3, D, D) bf16
        "num_heads": num_heads,
    }


# ----------------------------------------------------------------------------
# Kernel 1: tiled matmul  y = x @ w  (K-accumulating, f32 VMEM accumulator,
# bf16 MXU operands).  `k_axis` is the contraction grid axis (innermost).
# ----------------------------------------------------------------------------
def _matmul_kernel(x_ref, w_ref, o_ref, acc_ref, *, k_axis):
    @pl.when(pl.program_id(k_axis) == 0)
    def _init():
        acc_ref[...] = jnp.zeros(acc_ref.shape, acc_ref.dtype)

    acc_ref[...] += jnp.dot(
        x_ref[...].astype(jnp.bfloat16),
        w_ref[...].astype(jnp.bfloat16),
        preferred_element_type=jnp.float32,
    )

    @pl.when(pl.program_id(k_axis) == pl.num_programs(k_axis) - 1)
    def _finalize():
        o_ref[...] = acc_ref[...].astype(o_ref.dtype)


def linear_no_bias(x2d, w_t, out_dtype):
    """x2d: (M, K), w_t: (K, N) pre-transposed weight -> (M, N) in out_dtype."""
    M, K = x2d.shape
    K2, N = w_t.shape
    assert K == K2
    tm = _pick_tile(M, (512, 256, 128))
    tn = _pick_tile(N, (256, 128))
    tk = _pick_tile(K, (512, 256, 128))
    grid = (M // tm, N // tn, K // tk)
    return pl.pallas_call(
        functools.partial(_matmul_kernel, k_axis=2),
        out_shape=jax.ShapeDtypeStruct((M, N), out_dtype),
        grid_spec=pltpu.PrefetchScalarGridSpec(
            num_scalar_prefetch=0,
            grid=grid,
            in_specs=[
                pl.BlockSpec((tm, tk), lambda i, j, k: (i, k)),
                pl.BlockSpec((tk, tn), lambda i, j, k: (k, j)),
            ],
            out_specs=pl.BlockSpec((tm, tn), lambda i, j, k: (i, j)),
            scratch_shapes=[pltpu.VMEM((tm, tn), jnp.float32)],
        ),
        compiler_params=pltpu.CompilerParams(
            dimension_semantics=("parallel", "parallel", "arbitrary"),
            vmem_limit_bytes=_VMEM_LIMIT,
        ),
    )(x2d, w_t)


def fused_qkv_projection(x, w_stacked):
    """Self-attention fast path: one pallas_call computes Q, K, V with the
    pre-stacked (3, D, D) bf16 weight.  Returns (3, B, S, D) bf16 so the
    attention kernel can index Q/K/V directly (no slice copies)."""
    B, S, D = x.shape
    M = B * S
    x2d = x.reshape(M, D)
    tm = _pick_tile(M, (512, 256, 128))
    tn = _pick_tile(D, (256, 128))
    tk = _pick_tile(D, (512, 256, 128))
    grid = (3, M // tm, D // tn, D // tk)
    out = pl.pallas_call(
        functools.partial(_matmul_kernel, k_axis=3),
        out_shape=jax.ShapeDtypeStruct((3, M, D), jnp.bfloat16),
        grid_spec=pltpu.PrefetchScalarGridSpec(
            num_scalar_prefetch=0,
            grid=grid,
            in_specs=[
                pl.BlockSpec((tm, tk), lambda p, i, j, k: (i, k)),
                pl.BlockSpec((None, tk, tn), lambda p, i, j, k: (p, k, j)),
            ],
            out_specs=pl.BlockSpec((None, tm, tn), lambda p, i, j, k: (p, i, j)),
            scratch_shapes=[pltpu.VMEM((tm, tn), jnp.float32)],
        ),
        compiler_params=pltpu.CompilerParams(
            dimension_semantics=("parallel", "parallel", "parallel", "arbitrary"),
            vmem_limit_bytes=_VMEM_LIMIT,
        ),
    )(x2d, w_stacked)
    return out.reshape(3, B, S, D)


# ----------------------------------------------------------------------------
# Kernel 2: flash-style multi-head attention.
# Grid = (B, head_group, q_tile, kv_tile); kv_tile innermost ("arbitrary").
# Q/K/V are bf16 (tile, G*dk) column slices straight from the (B,S,D)
# projection layout; output written back in (B,S,D) layout (lane-dense).
# ----------------------------------------------------------------------------
def _mha_flash_kernel(*refs, group_heads, dk, has_mask, has_state, nq, nkv):
    if has_state:
        state_ref = refs[0]
        refs = refs[1:]
    if has_mask:
        q_ref, k_ref, v_ref, mask_ref, o_ref, m_sc, l_sc, acc_sc = refs
    else:
        q_ref, k_ref, v_ref, o_ref, m_sc, l_sc, acc_sc = refs

    ki = pl.program_id(3)
    G = group_heads

    @pl.when(ki == 0)
    def _init():
        m_sc[...] = jnp.full(m_sc.shape, -jnp.inf, m_sc.dtype)
        l_sc[...] = jnp.zeros(l_sc.shape, l_sc.dtype)
        acc_sc[...] = jnp.zeros(acc_sc.shape, acc_sc.dtype)

    def _tile_body():
        if has_mask:
            # 1 = keep, 0 = masked (torch masked_fill(mask == 0, -1e9)).
            is_masked = mask_ref[...] == 0                     # (tq, tkv) bool
        neg_fill = jnp.float32(-1000000000.0)
        for g in range(G):                                     # static unroll
            lo = g * dk
            qg = q_ref[:, lo:lo + dk]                          # (tq, dk) bf16 (scale pre-folded)
            kg = k_ref[:, lo:lo + dk]                          # (tkv, dk) bf16
            vg = v_ref[:, lo:lo + dk]                          # (tkv, dk) bf16
            # score = Q @ K^T : contract last dims, bf16 operands, f32 accum.
            s = lax.dot_general(qg, kg, (((1,), (1,)), ((), ())),
                                preferred_element_type=jnp.float32)  # (tq, tkv) f32
            if has_mask:
                s = jnp.where(is_masked, neg_fill, s)
            # online softmax update for this head (all elementwise math in f32)
            m_prev = m_sc[g]                                   # (tq, 1)
            m_new = jnp.maximum(m_prev, s.max(axis=-1, keepdims=True))
            alpha = jnp.exp(m_prev - m_new)
            p = jnp.exp(s - m_new)                             # (tq, tkv) f32
            l_sc[g] = alpha * l_sc[g] + p.sum(axis=-1, keepdims=True)
            acc_sc[g] = alpha * acc_sc[g] + jnp.dot(
                p.astype(jnp.bfloat16), vg,                    # bf16 MXU operands
                preferred_element_type=jnp.float32)            # (tq, dk) f32
            m_sc[g] = m_new

    if has_state:
        # 0 = fully masked (skip all compute), 1 = fully kept, 2 = partial.
        st = state_ref[pl.program_id(0) * (nq * nkv) + pl.program_id(2) * nkv + ki]

        @pl.when(st > 0)
        def _run():
            _tile_body()
    else:
        _tile_body()

    @pl.when(ki == pl.num_programs(3) - 1)
    def _finalize():
        l = l_sc[...]                                          # (G, tq, 1)
        safe_l = jnp.where(l > 0.0, l, 1.0)
        # Exact divide (once per q-tile, negligible cost). Rows whose kv tiles
        # were all skipped (fully masked query rows) produce 0.
        # TODO(synk): torch's masked_fill(-1e9) gives a uniform softmax for
        # fully-masked rows; with tile skipping those degenerate rows emit 0.
        out = jnp.where(l > 0.0, acc_sc[...] / safe_l, 0.0)    # (G, tq, dk)
        parts = [out[g] for g in range(G)]
        full = parts[0] if G == 1 else jnp.concatenate(parts, axis=-1)
        o_ref[...] = full.astype(o_ref.dtype)                  # lane-dense (tq, G*dk)


def _normalize_mask(mask, B, Sq, Sk):
    """Keep the mask in its natural (Bm, 1, Sq, Sk) shape; no broadcast to
    (B,S,S), no f32 materialization.  int8 when seq dims are tile aligned."""
    if mask is None:
        return None
    if mask.ndim == 2:
        mask = mask[None, None]
    elif mask.ndim == 3:
        mask = mask[:, None]
    assert mask.ndim == 4 and mask.shape[1] == 1, \
        "per-head masks not supported"  # TODO(synk): per-head mask support
    assert mask.shape[-2] == Sq and mask.shape[-1] == Sk
    assert mask.shape[0] in (1, B)
    dt = jnp.int8 if (Sq % 128 == 0 and Sk % 128 == 0) else jnp.int32
    return mask.astype(dt)


def _flash_attention(Qa, Ka, Va, sels, mask4, num_heads):
    """sels[i] is None (input i is (B,S,D)) or an int selecting the leading
    axis of a fused (3,B,S,D) QKV tensor."""
    q_sel, k_sel, v_sel = sels
    if q_sel is None:
        B, Sq, D = Qa.shape
        Sk = Ka.shape[1]
    else:
        _, B, Sq, D = Qa.shape
        Sk = Sq
    H = num_heads
    dk = D // H
    G = _pick_head_group(H, dk)
    n_groups = H // G
    # tq/tkv kept at <=128/256 to bound vreg pressure of the unrolled head loop
    # (s,p tiles); tkv capped at 128 whenever more than one head per step.
    tq = _pick_tile(Sq, (128,))
    tkv = _pick_tile(Sk, (128,) if G > 1 else (256, 128))
    nq, nkv = Sq // tq, Sk // tkv
    grid = (B, n_groups, nq, nkv)
    has_mask = mask4 is not None

    # Per-(b, q-tile, kv-tile) block state, scalar-prefetched into SMEM.
    state = None
    if has_mask:
        Bm = mask4.shape[0]
        keep = (mask4[:, 0] != 0).reshape(Bm, nq, tq, nkv, tkv)
        any_keep = keep.any(axis=(2, 4))                       # (Bm, nq, nkv)
        all_keep = keep.all(axis=(2, 4))
        state = jnp.where(all_keep, 1, jnp.where(any_keep, 2, 0)).astype(jnp.int32)
        if Bm != B:
            state = jnp.broadcast_to(state, (B, nq, nkv))
        state = state.reshape(-1)                              # 1D for SMEM

    def in_spec(sel, seq_tile, is_query):
        def idx(b, g, qi, kvi, *_, _sel=sel, _isq=is_query):
            s_idx = qi if _isq else kvi
            if _sel is None:
                return (b, s_idx, g)
            return (_sel, b, s_idx, g)
        if sel is None:
            return pl.BlockSpec((None, seq_tile, G * dk), idx)
        return pl.BlockSpec((None, None, seq_tile, G * dk), idx)

    in_specs = [
        in_spec(q_sel, tq, True),
        in_spec(k_sel, tkv, False),
        in_spec(v_sel, tkv, False),
    ]
    inputs = [Qa, Ka, Va]
    if has_mask:
        mask_b_is_one = (mask4.shape[0] == 1)

        def mask_idx(b, g, qi, kvi, *_):
            return (0 if mask_b_is_one else b, 0, qi, kvi)

        in_specs.append(pl.BlockSpec((None, None, tq, tkv), mask_idx))
        inputs.append(mask4)

    o_spec = pl.BlockSpec((None, tq, G * dk), lambda b, g, qi, kvi, *_: (b, qi, g))

    kernel = functools.partial(
        _mha_flash_kernel, group_heads=G, dk=dk,
        has_mask=has_mask, has_state=has_mask, nq=nq, nkv=nkv)

    call = pl.pallas_call(
        kernel,
        out_shape=jax.ShapeDtypeStruct((B, Sq, D), jnp.float32),
        grid_spec=pltpu.PrefetchScalarGridSpec(
            num_scalar_prefetch=1 if has_mask else 0,
            grid=grid,
            in_specs=in_specs,
            out_specs=o_spec,
            scratch_shapes=[
                pltpu.VMEM((G, tq, 1), jnp.float32),    # running max m
                pltpu.VMEM((G, tq, 1), jnp.float32),    # running sum l
                pltpu.VMEM((G, tq, dk), jnp.float32),   # running output acc
            ],
        ),
        compiler_params=pltpu.CompilerParams(
            dimension_semantics=("parallel", "parallel", "parallel", "arbitrary"),
            vmem_limit_bytes=_VMEM_LIMIT,
        ),
    )
    if has_mask:
        return call(state, *inputs)
    return call(*inputs)


# ----------------------------------------------------------------------------
# Full module forward (inference; nn.Dropout is identity at eval / p=0).
# ----------------------------------------------------------------------------
def multihead_attention(q, k, v, mask, prepared):
    """q: (B,Sq,D); k,v: (B,Sk,D); mask broadcastable to (B,1,Sq,Sk) (1=keep,
    0=mask) or None.  `prepared` comes from prepare_params()."""
    B, Sq, D = q.shape
    Sk = k.shape[1]
    H = prepared["num_heads"]
    mask4 = _normalize_mask(mask, B, Sq, Sk)

    if (q is k) and (k is v):
        # Self-attention: fused single-call QKV projection -> (3,B,S,D) bf16.
        qkv = fused_qkv_projection(q, prepared["wqkv"])
        attn = _flash_attention(qkv, qkv, qkv, (0, 1, 2), mask4, H)
    else:
        Q = linear_no_bias(q.reshape(B * Sq, D), prepared["wq_t"],
                           jnp.bfloat16).reshape(B, Sq, D)
        K = linear_no_bias(k.reshape(B * Sk, D), prepared["wk_t"],
                           jnp.bfloat16).reshape(B, Sk, D)
        V = linear_no_bias(v.reshape(B * Sk, D), prepared["wv_t"],
                           jnp.bfloat16).reshape(B, Sk, D)
        attn = _flash_attention(Q, K, V, (None, None, None), mask4, H)

    # attention output is already in (B, S, D) layout -> no merge transpose.
    out = linear_no_bias(attn.reshape(B * Sq, D), prepared["wo_t"], q.dtype)
    return out.reshape(B, Sq, D)

    # TODO(synk): training-mode dropout on attention probabilities and the
    # module's `self.attention` (full score tensor) side output are not wired up.


# ----------------------------------------------------------------------------
# Reference (pure JAX, fp32) for sanity check.
# ----------------------------------------------------------------------------
def reference_mha(q, k, v, mask, params, num_heads):
    B, Sq, D = q.shape
    Sk = k.shape[1]
    H = num_heads
    dk = D // H
    Q = q @ params["Wq"].T
    K = k @ params["Wk"].T
    V = v @ params["Wv"].T
    Qh = Q.reshape(B, Sq, H, dk).transpose(0, 2, 1, 3)
    Kh = K.reshape(B, Sk, H, dk).transpose(0, 2, 1, 3)
    Vh = V.reshape(B, Sk, H, dk).transpose(0, 2, 1, 3)
    score = jnp.einsum("bhqd,bhkd->bhqk", Qh, Kh / math.sqrt(dk))
    if mask is not None:
        score = jnp.where(mask == 0, -1000000000.0, score)
    p = jax.nn.softmax(score, axis=-1)
    x = jnp.einsum("bhqk,bhkd->bhqd", p, Vh)
    x = x.transpose(0, 2, 1, 3).reshape(B, Sq, D)
    return x @ params["Wo"].T


if __name__ == "__main__":
    B, S, D, H = 2, 8, 32, 4

    key = jax.random.PRNGKey(0)
    kq, kk, kv, k1, k2, k3, k4 = jax.random.split(key, 7)

    q = jax.random.normal(kq, (B, S, D), dtype=jnp.float32)
    kx = jax.random.normal(kk, (B, S, D), dtype=jnp.float32)
    vx = jax.random.normal(kv, (B, S, D), dtype=jnp.float32)

    # torch Linear layout: (out_features, in_features)
    bound = 1.0 / math.sqrt(D)
    params = {
        "Wq": jax.random.uniform(k1, (D, D), jnp.float32, -bound, bound),
        "Wk": jax.random.uniform(k2, (D, D), jnp.float32, -bound, bound),
        "Wv": jax.random.uniform(k3, (D, D), jnp.float32, -bound, bound),
        "Wo": jax.random.uniform(k4, (D, D), jnp.float32, -bound, bound),
    }
    prepared = prepare_params(params, H)   # one-time prep (transposes, bf16, scale fold)

    # causal mask (1 = keep, 0 = masked), broadcast over heads
    mask = jnp.broadcast_to(jnp.tril(jnp.ones((S, S), jnp.int32)), (B, 1, S, S))

    tol = 5e-2  # bf16 MXU operands (f32 accumulation) vs fp32 reference

    # Cross-attention path (distinct q/k/v -> 3 tiled projection calls).
    out = jax.block_until_ready(multihead_attention(q, kx, vx, mask, prepared))
    ref = reference_mha(q, kx, vx, mask, params, H)
    assert out.shape == (B, S, D)
    err = float(jnp.max(jnp.abs(out - ref)))
    assert jnp.allclose(out, ref, atol=tol, rtol=tol), f"cross max err = {err}"

    # Self-attention path (q is k is v -> fused single-call QKV projection).
    out_s = jax.block_until_ready(multihead_attention(q, q, q, mask, prepared))
    ref_s = reference_mha(q, q, q, mask, params, H)
    err_s = float(jnp.max(jnp.abs(out_s - ref_s)))
    assert jnp.allclose(out_s, ref_s, atol=tol, rtol=tol), f"self max err = {err_s}"

    # mask=None path (no mask input, no select, no block-state prefetch).
    out_n = jax.block_until_ready(multihead_attention(q, kx, vx, None, prepared))
    ref_n = reference_mha(q, kx, vx, None, params, H)
    err_n = float(jnp.max(jnp.abs(out_n - ref_n)))
    assert jnp.allclose(out_n, ref_n, atol=tol, rtol=tol), f"nomask max err = {err_n}"

    print("KERNEL_OK")
</pallas_src>

<mosaic_0001>
module attributes {stable_mosaic.version = 11 : i64} {
  func.func @_matmul_kernel(%arg0: i32, %arg1: i32, %arg2: i32, %arg3: memref<16x32xf32, #tpu.memory_space<vmem>>, %arg4: memref<32x32xbf16, #tpu.memory_space<vmem>>, %arg5: memref<16x32xbf16, #tpu.memory_space<vmem>>, %arg6: memref<16x32xf32, #tpu.memory_space<vmem>>) attributes {dimension_semantics = [#tpu.dimension_semantics<parallel>, #tpu.dimension_semantics<parallel>, #tpu.dimension_semantics<arbitrary>], iteration_bounds = array<i64: 1, 1, 1>, scalar_prefetch = 0 : i64, scratch_operands = 1 : i64, tpu.core_type = #tpu.core_type<tc>, window_params = [{transform_indices = @transform_0, window_bounds = array<i64: 16, 32>}, {transform_indices = @transform_1, window_bounds = array<i64: 32, 32>}, {transform_indices = @transform_2, window_bounds = array<i64: 16, 32>}]} {
    %c0_i32 = arith.constant 0 : i32
    %0 = arith.cmpi eq, %arg2, %c0_i32 : i32
    %1 = arith.extui %0 : i1 to i32
    %c0_i32_0 = arith.constant 0 : i32
    %2 = arith.cmpi ne, %1, %c0_i32_0 : i32
    scf.if %2 {
      %cst_10 = arith.constant 0.000000e+00 : f32
      %13 = vector.broadcast %cst_10 : f32 to vector<16x32xf32>
      %c0_11 = arith.constant 0 : index
      %c0_12 = arith.constant 0 : index
      %14 = vector.load %arg6[%c0_11, %c0_12] : memref<16x32xf32, #tpu.memory_space<vmem>>, vector<16x32xf32>
      tpu.vector_store %arg6[%c0_11, %c0_12], %13 {strides = array<i32>} : memref<16x32xf32, #tpu.memory_space<vmem>>, vector<16x32xf32>,
    } else {
    }
    %c0 = arith.constant 0 : index
    %c0_1 = arith.constant 0 : index
    %3 = vector.load %arg6[%c0, %c0_1] : memref<16x32xf32, #tpu.memory_space<vmem>>, vector<16x32xf32>
    %c0_2 = arith.constant 0 : index
    %c0_3 = arith.constant 0 : index
    %4 = vector.load %arg3[%c0_2, %c0_3] : memref<16x32xf32, #tpu.memory_space<vmem>>, vector<16x32xf32>
    %5 = arith.truncf %4 : vector<16x32xf32> to vector<16x32xbf16>
    %c0_4 = arith.constant 0 : index
    %c0_5 = arith.constant 0 : index
    %6 = vector.load %arg4[%c0_4, %c0_5] : memref<32x32xbf16, #tpu.memory_space<vmem>>, vector<32x32xbf16>
    %cst = arith.constant dense<0.000000e+00> : vector<16x32xf32>
    %7 = tpu.matmul %5, %6, %cst {dimension_numbers = #tpu.dot_dimension_numbers<[1], [0], [0], [1], [0, 0, 1, 1], [], []>} : vector<16x32xbf16>, vector<32x32xbf16>, vector<16x32xf32> -> vector<16x32xf32>
    %8 = arith.addf %3, %7 : vector<16x32xf32>
    %c0_6 = arith.constant 0 : index
    %c0_7 = arith.constant 0 : index
    %9 = vector.load %arg6[%c0_6, %c0_7] : memref<16x32xf32, #tpu.memory_space<vmem>>, vector<16x32xf32>
    tpu.vector_store %arg6[%c0_6, %c0_7], %8 {strides = array<i32>} : memref<16x32xf32, #tpu.memory_space<vmem>>, vector<16x32xf32>,
    %c0_i32_8 = arith.constant 0 : i32
    %10 = arith.cmpi eq, %arg2, %c0_i32_8 : i32
    %11 = arith.extui %10 : i1 to i32
    %c0_i32_9 = arith.constant 0 : i32
    %12 = arith.cmpi ne, %11, %c0_i32_9 : i32
    scf.if %12 {
      %c0_10 = arith.constant 0 : index
      %c0_11 = arith.constant 0 : index
      %13 = vector.load %arg6[%c0_10, %c0_11] : memref<16x32xf32, #tpu.memory_space<vmem>>, vector<16x32xf32>
      %14 = arith.truncf %13 : vector<16x32xf32> to vector<16x32xbf16>
      %c0_12 = arith.constant 0 : index
      %c0_13 = arith.constant 0 : index
      %15 = vector.load %arg5[%c0_12, %c0_13] : memref<16x32xbf16, #tpu.memory_space<vmem>>, vector<16x32xbf16>
      tpu.vector_store %arg5[%c0_12, %c0_13], %14 {strides = array<i32>} : memref<16x32xbf16, #tpu.memory_space<vmem>>, vector<16x32xbf16>,
    } else {
    }
    return
  }
  func.func @transform_0(%arg0: i32, %arg1: i32, %arg2: i32) -> (i32, i32) {
    %c0_i32 = arith.constant 0 : i32
    return %arg0, %arg2 : i32, i32
  }
  func.func @transform_1(%arg0: i32, %arg1: i32, %arg2: i32) -> (i32, i32) {
    %c0_i32 = arith.constant 0 : i32
    return %arg2, %arg1 : i32, i32
  }
  func.func @transform_2(%arg0: i32, %arg1: i32, %arg2: i32) -> (i32, i32) {
    %c0_i32 = arith.constant 0 : i32
    return %arg0, %arg1 : i32, i32
  }
}

</mosaic_0001>

<bundles_post_ra>
// kernel: tpu_custom_call.1
= control target key start
LH: loop header
LB: loop body
LE: loop exit
PB: predicated region body
PF: predicated region fallthrough
CT: control target
= control target key end

     0   :  { %7 = vsyncpa [#allocation4], 0  ;;  %s324_s0 = inlined_call_operand.hbm [shape: f32[16,32], index: 0, kind: input, shape index: {}]   ;;  %s325_s1 = inlined_call_operand.hbm [shape: bf16[32,32], index: 1, kind: input, shape index: {}]   ;;  %s326_s2 = inlined_call_operand.hbm [shape: bf16[16,32], index: 2, kind: output, shape index: {}]  }
   0x1   :  { %8 = vsyncpa [#allocation7], 0 }
   0x2   :  { %9 = vsyncpa [#allocation5], 0  ;;  %s253_s9 = smov [#allocation3]   ;;  %s181_s13 = scalar_lea.hbm %s324_s0, 256 }
   0x3   :  { %s15_s10 = sshll.u32 %s253_s9, 4  ;;  %p182_p0 = scmp.ne.s32.totalorder %s324_s0, %s181_s13  ;;  %s16_s10 = int_to_ptr.vmem [resolvable:$true] %s15_s10 }
   0x4   :  { %p185_p1 = scmp.lt.u32.totalorder %s181_s13, %s324_s0 }
   0x6   :  { %p187_p2 = pnand %p185_p1, %p182_p0 }
   0x8   :  { %190 = shalt.err (!%p187_p2)
}
   0x9   :  { %s191_s18 = scalar_lea.vmem %s16_s10, 256  ;;  %p196_p4 = scmp.lt.s32.totalorder %s16_s10, %s16_s10 }
   0xa   :  { %p192_p3 = scmp.ne.s32.totalorder %s16_s10, %s191_s18  ;;  %p197_p5 = scmp.lt.s32.totalorder %s191_s18, %s191_s18 }
   0xc   :  { %p198_p6 = por %p197_p5, %p196_p4 }
   0xe   :  { %p199_p7 = pnand %p198_p6, %p192_p3 }
  0x10   :  { %202 = shalt.err (!%p199_p7)
}
  0x11   :  { %s254_s19 = smov 128   ;;  %s255_s20 = smov 8  }
  0x12   :  { %21 = dma.hbm_to_vmem [thread:$0]  %s324_s0, 256, %s16_s10, [#allocation4], %s254_s19, %s254_s19, %s255_s20  }
  0x13   :  { %s256_s23 = smov [#allocation6]   ;;  %s203_s27 = scalar_lea.hbm %s325_s1, 256 }
  0x14   :  { %s27_s24 = sshll.u32 %s256_s23, 4  ;;  %p204_p8 = scmp.ne.s32.totalorder %s325_s1, %s203_s27  ;;  %s28_s24 = int_to_ptr.vmem [resolvable:$true] %s27_s24 }
  0x15   :  { %p207_p9 = scmp.lt.u32.totalorder %s203_s27, %s325_s1 }
  0x17   :  { %p209_p10 = pnand %p207_p9, %p204_p8 }
  0x19   :  { %212 = shalt.err (!%p209_p10)
}
  0x1a   :  { %s213_s4 = scalar_lea.vmem %s28_s24, 256  ;;  %p218_p12 = scmp.lt.s32.totalorder %s28_s24, %s28_s24 }
  0x1b   :  { %p214_p11 = scmp.ne.s32.totalorder %s28_s24, %s213_s4  ;;  %p219_p13 = scmp.lt.s32.totalorder %s213_s4, %s213_s4 }
  0x1d   :  { %p220_p0 = por %p219_p13, %p218_p12 }
  0x1f   :  { %p221_p1 = pnand %p220_p0, %p214_p11 }
  0x21   :  { %224 = shalt.err (!%p221_p1)
}
  0x22   :  { %s257_s0 = smov 64   ;;  %s258_s5 = smov 4  }
  0x23   :  { %33 = dma.hbm_to_vmem [thread:$0]  %s325_s1, 256, %s28_s24, [#allocation7], %s257_s0, %s257_s0, %s258_s5  }
  0x24   :  { %247 = dma.done.wait [#allocation4], 256  }
  0x25   :  { %248 = vsyncadd [#allocation4], 4294967040 }
  0x26   :  { %249 = dma.done.wait [#allocation7], 256  }
  0x27   :  { %250 = vsyncadd [#allocation7], 4294967040  ;;  %vm45_vm0 = vcmask 261120   ;;  %v259_v0 = vmov 0.0   ;;  %vm260_vm1 = vmmov 0   ;;  %v179_v1 = vld [vmem:[#allocation6] sm:$0xff]  }
  0x28   :  { %162 = vmatprep.subr.bf16.mxu0 %v259_v0  ;;  %166 = vmatprep.mubr.msk.bf16.mxu0 %vm260_vm1, %v259_v0  ;;  %46 = vst.msk [vmem:[#allocation2] sm:$0xff] %vm45_vm0, %v259_v0  ;;  %47 = vst.msk [vmem:[#allocation2 + $0x8] sm:$0xff] %vm45_vm0, %v259_v0  ;;  %v180_v2 = vld [vmem:[#allocation6 + $0x8] sm:$0xff]   ;;  %v50_v3 = vld [vmem:[#allocation3] sm:$0xff]  ;;  %vm131_vm2 = vcmask 257024   ;;  %s261_s1 = smov [#allocation8]  }
  0x29   :  { %163 = vmatpush3.bf16.msra.mxu0 %v179_v1  ;;  %v51_v4 = vld [vmem:[#allocation3 + $0x8] sm:$0xff]  ;;  %s139_s8 = sshll.u32 %s261_s1, 4  ;;  %s140_s8 = int_to_ptr.vmem [resolvable:$true] %s139_s8 }
  0x2a   :  { %164 = vmatprep.subr.bf16.mxu0 %v259_v0  ;;  %v52_v5 = vpack.c.bf16 %v51_v4, %v50_v3  ;;  %s225_s9 = scalar_lea.vmem %s140_s8, 128  ;;  %p230_p3 = scmp.lt.s32.totalorder %s140_s8, %s140_s8 }
  0x2b   :  { %p226_p2 = scmp.ne.s32.totalorder %s140_s8, %s225_s9  ;;  %p231_p4 = scmp.lt.s32.totalorder %s225_s9, %s225_s9 }
  0x2d   :  { %165 = vmatpush3.bf16.msra.mxu0 %v180_v2  ;;  %p232_p5 = por %p231_p4, %p230_p3 }
  0x2f   :  { %v48_v6 = vld [vmem:[#allocation2] sm:$0xff]  ;;  %v49_v8 = vld [vmem:[#allocation2 + $0x8] sm:$0xff]  ;;  %p233_p6 = pnand %p232_p5, %p226_p2 }
  0x30   :  { %167 = vmatmul.mubr.msk.bf16.vlgmr.msra.gmra.mrb[0].mxu0 %vm45_vm0, %v52_v5 }
 0x103   :  { %v107_v7 = vpop.f32.mrb[0].mxu0 }
 0x104   :  { %v114_v9 = vadd.f32 %v107_v7, %v48_v6  ;;  %v168_v10 = vpop.f32.mrb[1].mxu0 }
 0x105   :  { %v110_v11 = vpop.f32.mrb[2].mxu0 }
 0x106   :  { %116 = vst.msk [vmem:[#allocation2] sm:$0xff] %vm45_vm0, %v114_v9  ;;  %v115_v12 = vadd.f32 %v110_v11, %v49_v8  ;;  %v169_v13 = vpop.f32.mrb[3].mxu0 }
 0x108   :  { %117 = vst.msk [vmem:[#allocation2 + $0x8] sm:$0xff] %vm45_vm0, %v115_v12 }
 0x10d   :  { %v121_v14 = vld [vmem:[#allocation2] sm:$0xff] }
 0x10e   :  { %v157_v15 = vpack.c.bf16 %v121_v14, %v121_v14 }
 0x10f   :  { %v122_v16 = vld [vmem:[#allocation2 + $0x8] sm:$0xff] }
 0x110   :  { %v158_v17 = vpack.c.bf16 %v122_v16, %v122_v16  ;;  %132 = vst.msk [vmem:[#allocation8] sm:$0xf] %vm131_vm2, %v157_v15 }
 0x112   :  { %133 = vst.msk [vmem:[#allocation8 + $0x4] sm:$0xf] %vm131_vm2, %v158_v17 }
 0x113   :  { %236 = shalt.err (!%p233_p6)
}
 0x114   :  { %s237_s12 = scalar_lea.hbm %s326_s2, 128 }
 0x115   :  { %p238_p7 = scmp.ne.s32.totalorder %s326_s2, %s237_s12  ;;  %p241_p8 = scmp.lt.u32.totalorder %s237_s12, %s326_s2 }
 0x117   :  { %p243_p9 = pnand %p241_p8, %p238_p7 }
 0x119   :  { %246 = shalt.err (!%p243_p9)
}
 0x11a   :  { %145 = dma.vmem_to_hbm [thread:$0]  %s140_s8, 128, %s326_s2, [#allocation5], %s257_s0, %s257_s0, %s258_s5  }
 0x11b   :  { %251 = dma.done.wait [#allocation5], 128  }
 0x11c   :  { %252 = vsyncadd [#allocation5], 4294967168 }
 0x11d   :  { %149 = vsyncpa [#allocation4], 1 }
 0x11e   :  { %150 = vsyncpa [#allocation7], 1 }
 0x11f   :  { %151 = vsyncpa [#allocation5], 1 }

</bundles_post_ra>
